<compile_context>
chip_gen: v5e
topology: v5e:2x2
jax: 0.10.0
libtpu: 0.0.40
codegen_flags: <defaults>
</compile_context>

<pallas_src>
import jax
import jax.numpy as jnp
from jax.experimental import pallas as pl
from jax.experimental.pallas import tpu as pltpu

_MiB = 1024 * 1024


def _round_up(a, b):
    return ((a + b - 1) // b) * b


def _chip_params():
    """Per-chip sizing: (vmem_limit_bytes, tile_vmem_budget, tm_granule, dim_sems)."""
    try:
        kind = jax.devices()[0].device_kind.lower()
    except Exception:
        kind = ""
    try:
        cap = getattr(pltpu.get_tpu_info(), "vmem_capacity_bytes", None)
    except Exception:
        cap = None
    if not cap:
        cap = 64 * _MiB  # conservative floor (v7x-sized); safe on every chip
    # <=48 MiB on the 64 MiB v7x parts, up to 96 MiB on 128 MiB v5e/v6e parts.
    vmem_limit = int(min(cap - 8 * _MiB, (cap * 3) // 4))
    vmem_budget = vmem_limit - 2 * _MiB
    tm_granule = 128 if "v5" in kind else 256  # MXU row granularity
    if "v7" in kind:
        # Two TensorCores share HBM on v7x; "parallel" alone does not shard the
        # grid across them, CORE_PARALLEL does.
        dim_sem = (pltpu.CORE_PARALLEL,)
    else:
        dim_sem = ("parallel",)
    return vmem_limit, vmem_budget, tm_granule, dim_sem


def _patch_embed_kernel(x_ref, w_ref, b_ref, o_ref):
    # x_ref: (TM, K) patch-row tile (compute dtype); streamed, double-buffered.
    # w_ref: (K, E)  projection weight (compute dtype); VMEM-resident.
    # b_ref: (1, E)  bias (f32); VMEM-resident.
    # o_ref: (TM, E) output tile.
    acc = jnp.dot(x_ref[...], w_ref[...], preferred_element_type=jnp.float32)
    o_ref[...] = (acc + b_ref[...]).astype(o_ref.dtype)


def patch_embedding(x, weight, bias, patch_size, *, compute_dtype=jnp.bfloat16,
                    out_dtype=None, tile_m=None):
    """Forward pass matching PyTorch PatchEmbedding.

    Args:
      x:      (B, C, H, W) float32, NCHW like PyTorch.
      weight: (E, C, p, p) conv weight (PyTorch Conv2d layout).
      bias:   (E,) conv bias.
      patch_size: p (kernel_size == stride).
      compute_dtype: dtype of the matmul operands (accumulation is always f32).
      out_dtype: output dtype (default: x.dtype). bf16 halves output HBM traffic.
      tile_m: optional override for the M tile size (testing / tuning).
    Returns:
      (B, num_patches, E) in out_dtype.
    """
    B, C, H, W = x.shape
    E = weight.shape[0]
    p = patch_size
    assert H % p == 0 and W % p == 0, "img size must be divisible by patch_size"
    Hp, Wp = H // p, W // p
    N = Hp * Wp
    K = C * p * p
    M = B * N
    out_dtype = x.dtype if out_dtype is None else out_dtype

    # --- layout glue: one fused cast+permute pass over the activation ---
    # (B, C, Hp, p, Wp, p) -> (B, Hp, Wp, C, p, p) -> (B*N, C*p*p); feature
    # order (c, ph, pw) matches the Conv2d (E, C, p, p) weight flatten.
    patches = x.astype(compute_dtype)
    patches = patches.reshape(B, C, Hp, p, Wp, p)
    patches = patches.transpose(0, 2, 4, 1, 3, 5)
    patches = patches.reshape(M, K)

    # conv weight (E, C, p, p) -> matmul weight (K, E); no lane padding of E.
    w_mat = weight.reshape(E, K).T.astype(compute_dtype)
    b_mat = bias.reshape(1, E).astype(jnp.float32)

    # --- tile-size selection (biggest tile within a per-chip VMEM budget) ---
    in_b = jnp.dtype(compute_dtype).itemsize
    out_b = jnp.dtype(out_dtype).itemsize
    vmem_limit, vmem_budget, tm_granule, dim_sem = _chip_params()
    resident_bytes = 2 * (K * E * in_b + E * 4)      # double-buffered weight + bias
    per_row_bytes = 2 * (K * in_b + E * out_b)       # double-buffered x + out rows
    if tile_m is not None:
        TM = max(8, (int(tile_m) // 8) * 8)
    else:
        tm_cap = max((vmem_budget - resident_bytes) // per_row_bytes, 8)
        TM = int(min(2048, tm_cap))
        if TM >= tm_granule:
            TM = (TM // tm_granule) * tm_granule     # full MXU row passes
        else:
            TM = max(8, (TM // 8) * 8)
        TM = int(min(TM, _round_up(M, 8)))

    grid = (pl.cdiv(M, TM),)                         # partial last block is masked

    cost = pl.CostEstimate(
        flops=2 * M * K * E,
        transcendentals=0,
        bytes_accessed=M * K * in_b + K * E * in_b + E * 4 + M * E * out_b,
    )

    out = pl.pallas_call(
        _patch_embed_kernel,
        out_shape=jax.ShapeDtypeStruct((M, E), out_dtype),
        grid_spec=pl.GridSpec(
            grid=grid,
            in_specs=[
                pl.BlockSpec((TM, K), lambda i: (i, 0)),   # streamed patch rows
                pl.BlockSpec((K, E), lambda i: (0, 0)),    # resident weight
                pl.BlockSpec((1, E), lambda i: (0, 0)),    # resident bias
            ],
            out_specs=pl.BlockSpec((TM, E), lambda i: (i, 0)),
        ),
        compiler_params=pltpu.CompilerParams(
            dimension_semantics=dim_sem,
            vmem_limit_bytes=vmem_limit,
        ),
        cost_estimate=cost,
    )(patches, w_mat, b_mat)

    # Exact (M, E) buffer -> pure reshape, no slice copy.
    return out.reshape(B, N, E)


if __name__ == "__main__":
    # Small shapes consistent with the module: img_size=16, patch_size=4,
    # in_channels=4, embed_dim=32 -> num_patches = (16//4)^2 = 16.
    B, C, H, W = 2, 4, 16, 16
    p = 4
    E = 32

    key = jax.random.PRNGKey(0)
    kx, kw, kb = jax.random.split(key, 3)
    x = jax.random.normal(kx, (B, C, H, W), dtype=jnp.float32)
    weight = jax.random.normal(kw, (E, C, p, p), dtype=jnp.float32) * 0.02
    bias = jax.random.normal(kb, (E,), dtype=jnp.float32) * 0.02

    # Reference: XLA conv (same semantics as nn.Conv2d stride=kernel) + flatten/transpose.
    ref = jax.lax.conv_general_dilated(
        x, weight, window_strides=(p, p), padding="VALID",
        dimension_numbers=("NCHW", "OIHW", "NCHW"),
    ) + bias.reshape(1, E, 1, 1)
    ref = ref.reshape(B, E, -1).transpose(0, 2, 1)  # flatten(2).transpose(1,2)

    N = (H // p) * (W // p)

    # 1) f32 operand parity path: tight tolerance.
    out_f32 = jax.block_until_ready(
        patch_embedding(x, weight, bias, p, compute_dtype=jnp.float32))
    assert out_f32.shape == (B, N, E), out_f32.shape
    assert jnp.allclose(out_f32, ref, atol=1e-4, rtol=1e-4)

    # 2) default bf16-operand / f32-accumulate path (input quantization only).
    out_bf16 = jax.block_until_ready(patch_embedding(x, weight, bias, p))
    assert out_bf16.shape == (B, N, E), out_bf16.shape
    assert jnp.allclose(out_bf16, ref, atol=3e-2, rtol=3e-2)

    # 3) bf16 output writeback (halves the dominant HBM stream for bf16 stacks).
    out_b16o = jax.block_until_ready(
        patch_embedding(x, weight, bias, p, out_dtype=jnp.bfloat16))
    assert out_b16o.dtype == jnp.bfloat16
    assert jnp.allclose(out_b16o.astype(jnp.float32), ref, atol=5e-2, rtol=5e-2)

    # 4) multi-tile grid with a partial last block (TM does not divide M):
    #    exercises the no-pad masked-block path.
    out_tiled = jax.block_until_ready(
        patch_embedding(x, weight, bias, p, compute_dtype=jnp.float32, tile_m=24))
    assert jnp.allclose(out_tiled, ref, atol=1e-4, rtol=1e-4)

    print("KERNEL_OK")
</pallas_src>

<mosaic_0001>
module attributes {stable_mosaic.version = 11 : i64} {
  func.func @_patch_embed_kernel(%arg0: i32, %arg1: memref<32x64xf32, #tpu.memory_space<vmem>>, %arg2: memref<64x32xf32, #tpu.memory_space<vmem>>, %arg3: memref<1x32xf32, #tpu.memory_space<vmem>>, %arg4: memref<32x32xf32, #tpu.memory_space<vmem>>) attributes {dimension_semantics = [#tpu.dimension_semantics<parallel>], iteration_bounds = array<i64: 1>, scalar_prefetch = 0 : i64, scratch_operands = 0 : i64, tpu.core_type = #tpu.core_type<tc>, window_params = [{transform_indices = @transform_0, window_bounds = array<i64: 32, 64>}, {pipeline_mode = #tpu.pipeline_mode<synchronous>, transform_indices = @transform_1, window_bounds = array<i64: 64, 32>}, {pipeline_mode = #tpu.pipeline_mode<synchronous>, transform_indices = @transform_2, window_bounds = array<i64: 1, 32>}, {transform_indices = @transform_3, window_bounds = array<i64: 32, 32>}]} {
    %c0 = arith.constant 0 : index
    %c0_0 = arith.constant 0 : index
    %0 = vector.load %arg1[%c0, %c0_0] : memref<32x64xf32, #tpu.memory_space<vmem>>, vector<32x64xf32>
    %c0_1 = arith.constant 0 : index
    %c0_2 = arith.constant 0 : index
    %1 = vector.load %arg2[%c0_1, %c0_2] : memref<64x32xf32, #tpu.memory_space<vmem>>, vector<64x32xf32>
    %cst = arith.constant dense<0.000000e+00> : vector<32x32xf32>
    %2 = tpu.matmul %0, %1, %cst {dimension_numbers = #tpu.dot_dimension_numbers<[1], [0], [0], [1], [0, 0, 1, 1], [], []>} : vector<32x64xf32>, vector<64x32xf32>, vector<32x32xf32> -> vector<32x32xf32>
    %c0_3 = arith.constant 0 : index
    %c0_4 = arith.constant 0 : index
    %3 = vector.load %arg3[%c0_3, %c0_4] : memref<1x32xf32, #tpu.memory_space<vmem>>, vector<1x32xf32>
    %4 = vector.broadcast %3 : vector<1x32xf32> to vector<32x32xf32>
    %5 = arith.addf %2, %4 : vector<32x32xf32>
    %c0_5 = arith.constant 0 : index
    %c0_6 = arith.constant 0 : index
    %6 = vector.load %arg4[%c0_5, %c0_6] : memref<32x32xf32, #tpu.memory_space<vmem>>, vector<32x32xf32>
    tpu.vector_store %arg4[%c0_5, %c0_6], %5 {strides = array<i32>} : memref<32x32xf32, #tpu.memory_space<vmem>>, vector<32x32xf32>,
    return
  }
  func.func @transform_0(%arg0: i32) -> (i32, i32) {
    %c0_i32 = arith.constant 0 : i32
    %c0_i32_0 = arith.constant 0 : i32
    return %arg0, %c0_i32 : i32, i32
  }
  func.func @transform_1(%arg0: i32) -> (i32, i32) {
    %c0_i32 = arith.constant 0 : i32
    %c0_i32_0 = arith.constant 0 : i32
    %c0_i32_1 = arith.constant 0 : i32
    return %c0_i32, %c0_i32_0 : i32, i32
  }
  func.func @transform_2(%arg0: i32) -> (i32, i32) {
    %c0_i32 = arith.constant 0 : i32
    %c0_i32_0 = arith.constant 0 : i32
    %c0_i32_1 = arith.constant 0 : i32
    return %c0_i32, %c0_i32_0 : i32, i32
  }
  func.func @transform_3(%arg0: i32) -> (i32, i32) {
    %c0_i32 = arith.constant 0 : i32
    %c0_i32_0 = arith.constant 0 : i32
    return %arg0, %c0_i32 : i32, i32
  }
}

</mosaic_0001>

<bundles_post_ra>
// kernel: tpu_custom_call.1
= control target key start
LH: loop header
LB: loop body
LE: loop exit
PB: predicated region body
PF: predicated region fallthrough
CT: control target
= control target key end

     0   :  { %s223_s0 = inlined_call_operand.vmem [shape: f32[32,64], index: 0, kind: input, shape index: {}]   ;;  %s224_s1 = inlined_call_operand.vmem [shape: f32[64,32], index: 1, kind: input, shape index: {}]   ;;  %s225_s2 = inlined_call_operand.vmem [shape: f32[1,32], index: 2, kind: input, shape index: {}]   ;;  %s226_s3 = inlined_call_operand.hbm [shape: f32[32,32], index: 3, kind: output, shape index: {}]  }
   0x1   :  { %v26_v0 = vld [vmem:[%s224_s1 + $0x38] sm:$0xff]  ;;  %v25_v1 = vld [vmem:[%s224_s1 + $0x30] sm:$0xff]  ;;  %v24_v2 = vld [vmem:[%s224_s1 + $0x28] sm:$0xff] }
   0x2   :  { %101 = vmatpush.msra.mxu2 %v26_v0  ;;  %102 = vmatpush.msra.mxu3 %v26_v0  ;;  %v23_v3 = vld [vmem:[%s224_s1 + $0x20] sm:$0xff] }
   0x3   :  { %52 = vmatpush.msra.mxu0 %v26_v0  ;;  %100 = vmatpush.msra.mxu1 %v26_v0 }
   0x4   :  { %104 = vmatpush.msra.mxu2 %v25_v1  ;;  %105 = vmatpush.msra.mxu3 %v25_v1 }
   0x5   :  { %53 = vmatpush.msra.mxu0 %v25_v1  ;;  %103 = vmatpush.msra.mxu1 %v25_v1 }
   0x6   :  { %8 = vsyncpa [#allocation3], 0  ;;  %107 = vmatpush.msra.mxu2 %v24_v2  ;;  %108 = vmatpush.msra.mxu3 %v24_v2  ;;  %v22_v4 = vld [vmem:[%s224_s1 + $0x18] sm:$0xff]  ;;  %v21_v5 = vld [vmem:[%s224_s1 + $0x10] sm:$0xff]  ;;  %vm31_vm0 = vcmask 523264   ;;  %vm73_vm1 = vcmask 261120  }
   0x7   :  { %54 = vmatpush.msra.mxu0 %v24_v2  ;;  %106 = vmatpush.msra.mxu1 %v24_v2  ;;  %v20_v6 = vld [vmem:[%s224_s1 + $0x8] sm:$0xff]  ;;  %v19_v7 = vld [vmem:[%s224_s1] sm:$0xff]  ;;  %v17_v8 = vld [vmem:[%s223_s0 + $0x10] sm:$0xff]  ;;  %s154_s10 = smov [#allocation2]   ;;  %s156_s14 = smov 8  }
   0x8   :  { %110 = vmatpush.msra.mxu2 %v23_v3  ;;  %111 = vmatpush.msra.mxu3 %v23_v3  ;;  %v18_v9 = vld [vmem:[%s223_s0 + $0x18] sm:$0xff]  ;;  %v15_v10 = vld [vmem:[%s223_s0] sm:$0xff]  ;;  %v16_v11 = vld [vmem:[%s223_s0 + $0x8] sm:$0xff]  ;;  %s82_s11 = sshll.u32 %s154_s10, 4  ;;  %s84_s0 = sshll.u32 %s226_s3, 4  ;;  %s83_s11 = int_to_ptr.vmem [resolvable:$true] %s82_s11  ;;  %s85_s0 = int_to_ptr.hbm [resolvable:$true] %s84_s0 }
   0x9   :  { %55 = vmatpush.msra.mxu0 %v23_v3  ;;  %109 = vmatpush.msra.mxu1 %v23_v3  ;;  %v127_v12 = vld [vmem:[%s225_s2] ss:$0 sm:$0xff]  ;;  %s155_s2 = smov 128  }
   0xa   :  { %113 = vmatpush.msra.mxu2 %v22_v4  ;;  %114 = vmatpush.msra.mxu3 %v22_v4 }
   0xb   :  { %56 = vmatpush.msra.mxu0 %v22_v4  ;;  %112 = vmatpush.msra.mxu1 %v22_v4 }
   0xc   :  { %116 = vmatpush.msra.mxu2 %v21_v5  ;;  %117 = vmatpush.msra.mxu3 %v21_v5 }
   0xd   :  { %57 = vmatpush.msra.mxu0 %v21_v5  ;;  %115 = vmatpush.msra.mxu1 %v21_v5 }
   0xe   :  { %119 = vmatpush.msra.mxu2 %v20_v6  ;;  %120 = vmatpush.msra.mxu3 %v20_v6 }
   0xf   :  { %58 = vmatpush.msra.mxu0 %v20_v6  ;;  %118 = vmatpush.msra.mxu1 %v20_v6 }
  0x10   :  { %122 = vmatpush.msra.mxu2 %v19_v7  ;;  %123 = vmatpush.msra.mxu3 %v19_v7 }
  0x11   :  { %98 = vmatmul.msk.f32.vlgmr.msra.gmra.mxu2 %vm31_vm0, %v17_v8  ;;  %99 = vmatmul.msk.f32.vlgmr.msra.gmra.mxu3 %vm31_vm0, %v18_v9 }
  0x12   :  { %59 = vmatpush.msra.mxu0 %v19_v7  ;;  %121 = vmatpush.msra.mxu1 %v19_v7 }
  0x13   :  { %96 = vmatmul.msk.f32.vlgmr.msra.gmra.mxu0 %vm31_vm0, %v15_v10  ;;  %97 = vmatmul.msk.f32.vlgmr.msra.gmra.mxu1 %vm31_vm0, %v16_v11 }
  0x90   :  { %v61_v13 = vpop.f32.mrf.mxu0  ;;  %v64_v14 = vpop.f32.mrf.mxu1 }
  0x91   :  { %v62_v15 = vadd.f32 %v127_v12, %v61_v13  ;;  %v65_v16 = vadd.f32 %v127_v12, %v64_v14 }
  0x93   :  { %74 = vst.msk [vmem:[#allocation2] sm:$0xff] %vm73_vm1, %v62_v15 }
  0x94   :  { %75 = vst.msk [vmem:[#allocation2 + $0x8] sm:$0xff] %vm73_vm1, %v65_v16  ;;  %v67_v17 = vpop.f32.mrf.mxu2  ;;  %v70_v18 = vpop.f32.mrf.mxu3 }
  0x95   :  { %v68_v19 = vadd.f32 %v127_v12, %v67_v17  ;;  %v71_v20 = vadd.f32 %v127_v12, %v70_v18 }
  0x97   :  { %76 = vst.msk [vmem:[#allocation2 + $0x10] sm:$0xff] %vm73_vm1, %v68_v19 }
  0x98   :  { %77 = vst.msk [vmem:[#allocation2 + $0x18] sm:$0xff] %vm73_vm1, %v71_v20 }
  0x99   :  { %90 = dma.vmem_to_hbm [thread:$0]  %s83_s11, 512, %s85_s0, [#allocation3], %s155_s2, %s155_s2, %s156_s14  }
  0x9a   :  { %152 = dma.done.wait [#allocation3], 512  }
  0x9b   :  { %153 = vsyncadd [#allocation3], 4294966784 }
  0x9c   :  { %95 = vsyncpa [#allocation3], 1 }

</bundles_post_ra>
